<compile_context>
chip_gen: v6e
topology: v6e:2x2x1
jax: 0.10.0
libtpu: 0.0.40
codegen_flags: <defaults>
</compile_context>

<pallas_src>
import functools

import numpy as np
import jax
import jax.numpy as jnp
from jax.experimental import pallas as pl
from jax.experimental.pallas import tpu as pltpu

EPS = 1e-20


def _round_up(x, m):
    return ((x + m - 1) // m) * m


def _gumbel_softmax_kernel(x_ref, g_ref, prob_ref, y_ref, *, inv_temperature, hard):
    # Block shape: (tile_rows, n_class).  Class axis (softmax dim=-1) on lanes,
    # rows on sublanes.  All math in f32, stores cast to the output dtype.
    x = x_ref[...].astype(jnp.float32)

    # ---- prob = softmax(logits, dim=-1) ----
    m = jnp.max(x, axis=-1, keepdims=True)
    e = jnp.exp(x - m)
    s = jnp.sum(e, axis=-1, keepdims=True)
    prob_ref[...] = (e * (1.0 / s)).astype(prob_ref.dtype)   # per-row recip, per-elt mul

    # ---- z = (logits + gumbel) / temperature ----
    z = x + g_ref[...].astype(jnp.float32)
    if inv_temperature != 1.0:                                # static: skipped for T == 1
        z = z * jnp.float32(inv_temperature)

    if hard:
        # argmax(softmax(z)) == argmax(z): skip exp / sum / divide entirely.
        n_class = z.shape[-1]
        col = jax.lax.broadcasted_iota(jnp.int32, z.shape, z.ndim - 1)
        zmax = jnp.max(z, axis=-1, keepdims=True)
        # first (lowest) index among ties, like torch
        ind = jnp.min(jnp.where(z == zmax, col, n_class), axis=-1, keepdims=True)
        # forward value of (y_hard - y).detach() + y is exactly y_hard
        y_ref[...] = (col == ind).astype(y_ref.dtype)
    else:
        mz = jnp.max(z, axis=-1, keepdims=True)
        ez = jnp.exp(z - mz)
        sz = jnp.sum(ez, axis=-1, keepdims=True)
        y_ref[...] = (ez * (1.0 / sz)).astype(y_ref.dtype)


def gumbel_softmax_forward(logits, key, temperature=1.0, hard=False,
                           tile_rows=16384, eps=EPS):
    """Returns (prob, y) matching GumbelSoftmax.forward semantics. Output dtype == logits dtype."""
    orig_shape = logits.shape
    orig_dtype = logits.dtype
    n_class = int(orig_shape[-1])
    rows = int(np.prod(orig_shape[:-1])) if len(orig_shape) > 1 else 1

    x2d = logits.reshape(rows, n_class)

    # Gumbel noise in XLA (no in-kernel PRNG: pltpu.prng_* is Mosaic-only).
    u = jax.random.uniform(key, (rows, n_class), dtype=jnp.float32)
    g2d = (-jnp.log(-jnp.log(u + eps) + eps)).astype(orig_dtype)

    # ---- choose a large row tile (~1 MiB / buffer) and pad rows minimally ----
    sub_mult = 16 if orig_dtype == jnp.bfloat16 else 8   # sublane packing
    n_tiles = max(1, pl.cdiv(rows, tile_rows))
    tr = _round_up(pl.cdiv(rows, n_tiles), sub_mult)
    rows_p = n_tiles * tr
    if rows_p != rows:
        pad = rows_p - rows
        x2d = jnp.pad(x2d, ((0, pad), (0, 0)))
        g2d = jnp.pad(g2d, ((0, pad), (0, 0)))

    kernel = functools.partial(
        _gumbel_softmax_kernel,
        inv_temperature=float(1.0 / float(temperature)),
        hard=bool(hard),
    )

    out_sds = jax.ShapeDtypeStruct((rows_p, n_class), orig_dtype)
    blk = pl.BlockSpec((tr, n_class), lambda i: (i, 0))

    prob, y = pl.pallas_call(
        kernel,
        out_shape=(out_sds, out_sds),
        grid=(rows_p // tr,),
        in_specs=[blk, blk],
        out_specs=(blk, blk),
        compiler_params=pltpu.CompilerParams(
            dimension_semantics=("parallel",),       # independent tiles -> both v7x TCs
            vmem_limit_bytes=32 * 1024 * 1024,       # 4 live arrays x 2 bufs fits easily
        ),
    )(x2d, g2d)

    if rows_p != rows:
        prob = prob[:rows]
        y = y[:rows]
    return prob.reshape(orig_shape), y.reshape(orig_shape)


if __name__ == "__main__":
    key = jax.random.PRNGKey(0)
    k_logits, k_soft, k_hard = jax.random.split(key, 3)

    # logits: [*, n_class] -> (batch=2, objects=64, n_class=16)
    logits = jax.random.normal(k_logits, (2, 64, 16), dtype=jnp.float32)

    prob, y_soft = gumbel_softmax_forward(logits, k_soft, temperature=1.0, hard=False)
    prob, y_soft = jax.block_until_ready(prob), jax.block_until_ready(y_soft)

    # also exercise the hard (straight-through) path
    _, y_hard = gumbel_softmax_forward(logits, k_hard, temperature=1.0, hard=True)
    y_hard = jax.block_until_ready(y_hard)

    # sanity checks vs pure-JAX reference for the deterministic parts
    prob_ref = jax.nn.softmax(logits, axis=-1)
    assert np.allclose(np.asarray(prob), np.asarray(prob_ref), atol=1e-5)
    assert np.allclose(np.asarray(y_soft).sum(-1), 1.0, atol=1e-4)
    assert np.allclose(np.asarray(y_hard).sum(-1), 1.0, atol=1e-6)
    assert set(np.unique(np.asarray(y_hard))) <= {0.0, 1.0}
    assert prob.shape == logits.shape and y_soft.shape == logits.shape

    print("KERNEL_OK")
</pallas_src>

<mosaic_0001>
module attributes {stable_mosaic.version = 11 : i64} {
  func.func @_gumbel_softmax_kernel(%arg0: i32, %arg1: memref<128x16xf32, #tpu.memory_space<vmem>>, %arg2: memref<128x16xf32, #tpu.memory_space<vmem>>, %arg3: memref<128x16xf32, #tpu.memory_space<vmem>>, %arg4: memref<128x16xf32, #tpu.memory_space<vmem>>) attributes {dimension_semantics = [#tpu.dimension_semantics<parallel>], iteration_bounds = array<i64: 1>, scalar_prefetch = 0 : i64, scratch_operands = 0 : i64, tpu.core_type = #tpu.core_type<tc>, window_params = [{transform_indices = @transform_0, window_bounds = array<i64: 128, 16>}, {transform_indices = @transform_1, window_bounds = array<i64: 128, 16>}, {transform_indices = @transform_2, window_bounds = array<i64: 128, 16>}, {transform_indices = @transform_3, window_bounds = array<i64: 128, 16>}]} {
    %c0 = arith.constant 0 : index
    %c0_0 = arith.constant 0 : index
    %0 = vector.load %arg1[%c0, %c0_0] : memref<128x16xf32, #tpu.memory_space<vmem>>, vector<128x16xf32>
    %cst = arith.constant dense<0xFF800000> : vector<128xf32>
    %1 = vector.multi_reduction <maximumf>, %0, %cst [1] : vector<128x16xf32> to vector<128xf32>
    %2 = vector.shape_cast %1 : vector<128xf32> to vector<128x1xf32>
    %3 = vector.broadcast %2 : vector<128x1xf32> to vector<128x16xf32>
    %4 = arith.subf %0, %3 : vector<128x16xf32>
    %5 = math.exp %4 : vector<128x16xf32>
    %cst_1 = arith.constant dense<0.000000e+00> : vector<128xf32>
    %6 = vector.multi_reduction <add>, %5, %cst_1 [1] : vector<128x16xf32> to vector<128xf32>
    %7 = vector.shape_cast %6 : vector<128xf32> to vector<128x1xf32>
    %cst_2 = arith.constant 1.000000e+00 : f32
    %8 = vector.broadcast %cst_2 : f32 to vector<128x1xf32>
    %9 = arith.divf %8, %7 : vector<128x1xf32>
    %10 = vector.broadcast %9 : vector<128x1xf32> to vector<128x16xf32>
    %11 = arith.mulf %5, %10 : vector<128x16xf32>
    %c0_3 = arith.constant 0 : index
    %c0_4 = arith.constant 0 : index
    %12 = vector.load %arg3[%c0_3, %c0_4] : memref<128x16xf32, #tpu.memory_space<vmem>>, vector<128x16xf32>
    tpu.vector_store %arg3[%c0_3, %c0_4], %11 {strides = array<i32>} : memref<128x16xf32, #tpu.memory_space<vmem>>, vector<128x16xf32>,
    %c0_5 = arith.constant 0 : index
    %c0_6 = arith.constant 0 : index
    %13 = vector.load %arg2[%c0_5, %c0_6] : memref<128x16xf32, #tpu.memory_space<vmem>>, vector<128x16xf32>
    %14 = arith.addf %0, %13 : vector<128x16xf32>
    %cst_7 = arith.constant dense<0xFF800000> : vector<128xf32>
    %15 = vector.multi_reduction <maximumf>, %14, %cst_7 [1] : vector<128x16xf32> to vector<128xf32>
    %16 = vector.shape_cast %15 : vector<128xf32> to vector<128x1xf32>
    %17 = vector.broadcast %16 : vector<128x1xf32> to vector<128x16xf32>
    %18 = arith.subf %14, %17 : vector<128x16xf32>
    %19 = math.exp %18 : vector<128x16xf32>
    %cst_8 = arith.constant dense<0.000000e+00> : vector<128xf32>
    %20 = vector.multi_reduction <add>, %19, %cst_8 [1] : vector<128x16xf32> to vector<128xf32>
    %21 = vector.shape_cast %20 : vector<128xf32> to vector<128x1xf32>
    %cst_9 = arith.constant 1.000000e+00 : f32
    %22 = vector.broadcast %cst_9 : f32 to vector<128x1xf32>
    %23 = arith.divf %22, %21 : vector<128x1xf32>
    %24 = vector.broadcast %23 : vector<128x1xf32> to vector<128x16xf32>
    %25 = arith.mulf %19, %24 : vector<128x16xf32>
    %c0_10 = arith.constant 0 : index
    %c0_11 = arith.constant 0 : index
    %26 = vector.load %arg4[%c0_10, %c0_11] : memref<128x16xf32, #tpu.memory_space<vmem>>, vector<128x16xf32>
    tpu.vector_store %arg4[%c0_10, %c0_11], %25 {strides = array<i32>} : memref<128x16xf32, #tpu.memory_space<vmem>>, vector<128x16xf32>,
    return
  }
  func.func @transform_0(%arg0: i32) -> (i32, i32) {
    %c0_i32 = arith.constant 0 : i32
    %c0_i32_0 = arith.constant 0 : i32
    return %arg0, %c0_i32 : i32, i32
  }
  func.func @transform_1(%arg0: i32) -> (i32, i32) {
    %c0_i32 = arith.constant 0 : i32
    %c0_i32_0 = arith.constant 0 : i32
    return %arg0, %c0_i32 : i32, i32
  }
  func.func @transform_2(%arg0: i32) -> (i32, i32) {
    %c0_i32 = arith.constant 0 : i32
    %c0_i32_0 = arith.constant 0 : i32
    return %arg0, %c0_i32 : i32, i32
  }
  func.func @transform_3(%arg0: i32) -> (i32, i32) {
    %c0_i32 = arith.constant 0 : i32
    %c0_i32_0 = arith.constant 0 : i32
    return %arg0, %c0_i32 : i32, i32
  }
}

</mosaic_0001>

<bundles_post_ra>
// kernel: tpu_custom_call.1
= control target key start
LH: loop header
LB: loop body
LE: loop exit
PB: predicated region body
PF: predicated region fallthrough
CT: control target
= control target key end

     0   :  { %vm29_vm0 = vcmask 130048   ;;  %s1194_s0 = inlined_call_operand.vmem [shape: f32[128,16], index: 0, kind: input, shape index: {}]   ;;  %s1195_s1 = inlined_call_operand.vmem [shape: f32[128,16], index: 1, kind: input, shape index: {}]   ;;  %s1196_s2 = inlined_call_operand.vmem [shape: f32[128,16], index: 2, kind: output, shape index: {0}]   ;;  %s1197_s3 = inlined_call_operand.vmem [shape: f32[128,16], index: 3, kind: output, shape index: {1}]  }
   0x1   :  { %v637_v0 = vld [vmem:[%s1194_s0] sm:$0xff]  ;;  %v642_v1 = vld [vmem:[%s1194_s0 + $0x10] sm:$0xff]  ;;  %v647_v2 = vld [vmem:[%s1194_s0 + $0x8] sm:$0xff] }
   0x2   :  { %v30_v3 = vsel %vm29_vm0, %v637_v0, -inf  ;;  %v36_v4 = vsel %vm29_vm0, %v642_v1, -inf  ;;  %v656_v5 = vld [vmem:[%s1194_s0 + $0x18] sm:$0xff]  ;;  %v33_v6 = vsel %vm29_vm0, %v647_v2, -inf  ;;  %v665_v8 = vld [vmem:[%s1194_s0 + $0x20] sm:$0xff]  ;;  %v670_v9 = vld [vmem:[%s1194_s0 + $0x28] sm:$0xff] }
   0x3   :  { %31 = vmax.xlane.f32.xlu0 %v30_v3  ;;  %37 = vmax.xlane.f32.xlu1 %v36_v4  ;;  %v39_v7 = vsel %vm29_vm0, %v656_v5, -inf  ;;  %v42_v10 = vsel %vm29_vm0, %v665_v8, -inf  ;;  %v45_v11 = vsel %vm29_vm0, %v670_v9, -inf  ;;  %v679_v12 = vld [vmem:[%s1194_s0 + $0x30] sm:$0xff]  ;;  %v684_v13 = vld [vmem:[%s1194_s0 + $0x38] sm:$0xff]  ;;  %v693_v16 = vld [vmem:[%s1194_s0 + $0x40] sm:$0xff] }
   0x4   :  { %v48_v14 = vsel %vm29_vm0, %v679_v12, -inf  ;;  %v51_v15 = vsel %vm29_vm0, %v684_v13, -inf  ;;  %v698_v17 = vld [vmem:[%s1194_s0 + $0x48] sm:$0xff]  ;;  %v54_v18 = vsel %vm29_vm0, %v693_v16, -inf  ;;  %v707_v20 = vld [vmem:[%s1194_s0 + $0x50] sm:$0xff]  ;;  %v712_v21 = vld [vmem:[%s1194_s0 + $0x58] sm:$0xff] }
   0x5   :  { %v57_v19 = vsel %vm29_vm0, %v698_v17, -inf  ;;  %v60_v22 = vsel %vm29_vm0, %v707_v20, -inf  ;;  %v63_v23 = vsel %vm29_vm0, %v712_v21, -inf  ;;  %v721_v24 = vld [vmem:[%s1194_s0 + $0x60] sm:$0xff]  ;;  %v726_v25 = vld [vmem:[%s1194_s0 + $0x68] sm:$0xff]  ;;  %v735_v28 = vld [vmem:[%s1194_s0 + $0x70] sm:$0xff] }
   0x6   :  { %v66_v26 = vsel %vm29_vm0, %v721_v24, -inf  ;;  %v69_v27 = vsel %vm29_vm0, %v726_v25, -inf  ;;  %v740_v29 = vld [vmem:[%s1194_s0 + $0x78] sm:$0xff]  ;;  %v238_v30 = vld [vmem:[%s1195_s1] sm:$0xff]  ;;  %v239_v31 = vld [vmem:[%s1195_s1 + $0x8] sm:$0xff]  ;;  %v72_v32 = vsel %vm29_vm0, %v735_v28, -inf }
   0x7   :  { %34 = vmax.xlane.f32.xlu0 %v33_v6  ;;  %40 = vmax.xlane.f32.xlu1 %v39_v7  ;;  %v75_v33 = vsel %vm29_vm0, %v740_v29, -inf  ;;  %v753_v34 = vadd.f32 %v238_v30, %v637_v0  ;;  %v756_v35 = vadd.f32 %v239_v31, %v647_v2  ;;  %v240_v36 = vld [vmem:[%s1195_s1 + $0x10] sm:$0xff]  ;;  %v241_v37 = vld [vmem:[%s1195_s1 + $0x18] sm:$0xff]  ;;  %v242_v42 = vld [vmem:[%s1195_s1 + $0x20] sm:$0xff] }
   0x8   :  { %v769_v40 = vadd.f32 %v240_v36, %v642_v1  ;;  %v772_v41 = vadd.f32 %v241_v37, %v656_v5  ;;  %v243_v43 = vld [vmem:[%s1195_s1 + $0x28] sm:$0xff]  ;;  %v785_v46 = vadd.f32 %v242_v42, %v665_v8  ;;  %v244_v48 = vld [vmem:[%s1195_s1 + $0x30] sm:$0xff]  ;;  %v245_v49 = vld [vmem:[%s1195_s1 + $0x38] sm:$0xff] }
   0x9   :  { %v270_v38 = vsel %vm29_vm0, %v753_v34, -inf  ;;  %v273_v39 = vsel %vm29_vm0, %v756_v35, -inf  ;;  %v788_v47 = vadd.f32 %v243_v43, %v670_v9  ;;  %v801_v52 = vadd.f32 %v244_v48, %v679_v12  ;;  %v246_v54 = vld [vmem:[%s1195_s1 + $0x40] sm:$0xff]  ;;  %v247_v55 = vld [vmem:[%s1195_s1 + $0x48] sm:$0xff]  ;;  %v248_v60 = vld [vmem:[%s1195_s1 + $0x50] sm:$0xff] }
   0xa   :  { %v276_v44 = vsel %vm29_vm0, %v769_v40, -inf  ;;  %v279_v45 = vsel %vm29_vm0, %v772_v41, -inf  ;;  %v282_v50 = vsel %vm29_vm0, %v785_v46, -inf  ;;  %v804_v53 = vadd.f32 %v245_v49, %v684_v13  ;;  %v249_v61 = vld [vmem:[%s1195_s1 + $0x58] sm:$0xff]  ;;  %v250_v6 = vld [vmem:[%s1195_s1 + $0x60] sm:$0xff]  ;;  %v251_v7 = vld [vmem:[%s1195_s1 + $0x68] sm:$0xff] }
   0xb   :  { %43 = vmax.xlane.f32.xlu0 %v42_v10  ;;  %46 = vmax.xlane.f32.xlu1 %v45_v11  ;;  %v285_v51 = vsel %vm29_vm0, %v788_v47, -inf  ;;  %v288_v56 = vsel %vm29_vm0, %v801_v52, -inf  ;;  %v817_v58 = vadd.f32 %v246_v54, %v693_v16  ;;  %v820_v59 = vadd.f32 %v247_v55, %v698_v17 }
   0xc   :  { %v291_v57 = vsel %vm29_vm0, %v804_v53, -inf  ;;  %v833_v3 = vadd.f32 %v248_v60, %v707_v20  ;;  %v836_v4 = vadd.f32 %v249_v61, %v712_v21 }
   0xd   :  { %v294_v62 = vsel %vm29_vm0, %v817_v58, -inf  ;;  %v297_v63 = vsel %vm29_vm0, %v820_v59, -inf }
   0xe   :  { %v300_v10 = vsel %vm29_vm0, %v833_v3, -inf  ;;  %v303_v11 = vsel %vm29_vm0, %v836_v4, -inf }
   0xf   :  { %49 = vmax.xlane.f32.xlu0 %v48_v14  ;;  %52 = vmax.xlane.f32.xlu1 %v51_v15  ;;  %v849_v14 = vadd.f32 %v250_v6, %v721_v24  ;;  %v852_v15 = vadd.f32 %v251_v7, %v726_v25 }
  0x13   :  { %55 = vmax.xlane.f32.xlu0 %v54_v18  ;;  %58 = vmax.xlane.f32.xlu1 %v57_v19  ;;  %v252_v18 = vld [vmem:[%s1195_s1 + $0x70] sm:$0xff]  ;;  %v253_v19 = vld [vmem:[%s1195_s1 + $0x78] sm:$0xff] }
  0x17   :  { %61 = vmax.xlane.f32.xlu0 %v60_v22  ;;  %64 = vmax.xlane.f32.xlu1 %v63_v23  ;;  %v306_v22 = vsel %vm29_vm0, %v849_v14, -inf  ;;  %v309_v23 = vsel %vm29_vm0, %v852_v15, -inf }
  0x1b   :  { %67 = vmax.xlane.f32.xlu0 %v66_v26  ;;  %70 = vmax.xlane.f32.xlu1 %v69_v27  ;;  %v865_v26 = vadd.f32 %v252_v18, %v735_v28  ;;  %v868_v27 = vadd.f32 %v253_v19, %v740_v29 }
  0x1d   :  { %v312_v30 = vsel %vm29_vm0, %v865_v26, -inf  ;;  %v315_v31 = vsel %vm29_vm0, %v868_v27, -inf }
  0x1f   :  { %73 = vmax.xlane.f32.xlu0 %v72_v32  ;;  %76 = vmax.xlane.f32.xlu1 %v75_v33 }
  0x23   :  { %271 = vmax.xlane.f32.xlu0 %v270_v38  ;;  %274 = vmax.xlane.f32.xlu1 %v273_v39 }
  0x27   :  { %277 = vmax.xlane.f32.xlu0 %v276_v44  ;;  %280 = vmax.xlane.f32.xlu1 %v279_v45 }
  0x2b   :  { %283 = vmax.xlane.f32.xlu0 %v282_v50  ;;  %286 = vmax.xlane.f32.xlu1 %v285_v51 }
  0x2f   :  { %289 = vmax.xlane.f32.xlu0 %v288_v56  ;;  %292 = vmax.xlane.f32.xlu1 %v291_v57 }
  0x33   :  { %295 = vmax.xlane.f32.xlu0 %v294_v62  ;;  %298 = vmax.xlane.f32.xlu1 %v297_v63 }
  0x37   :  { %301 = vmax.xlane.f32.xlu0 %v300_v10  ;;  %304 = vmax.xlane.f32.xlu1 %v303_v11 }
  0x3b   :  { %307 = vmax.xlane.f32.xlu0 %v306_v22  ;;  %310 = vmax.xlane.f32.xlu1 %v309_v23 }
  0x3f   :  { %313 = vmax.xlane.f32.xlu0 %v312_v30  ;;  %316 = vmax.xlane.f32.xlu1 %v315_v31 }
  0x8c   :  { %v32_v32 = vpop.xlane.xlu0 %31  ;;  %v38_v33 = vpop.xlane.xlu1 %37 }
  0x8d   :  { %v78_v36 = vsub.f32 %v637_v0, %v32_v32  ;;  %v80_v37 = vsub.f32 %v642_v1, %v38_v33 }
  0x8f   :  { %v94_v38 = vmul.f32 1.442695, %v78_v36  ;;  %v98_v39 = vmul.f32 1.442695, %v80_v37 }
  0x90   :  { %v35_v42 = vpop.xlane.xlu0 %34  ;;  %v41_v43 = vpop.xlane.xlu1 %40 }
  0x91   :  { %486 = vpow2.f32 %v94_v38  ;;  %v79_v44 = vsub.f32 %v647_v2, %v35_v42  ;;  %v81_v45 = vsub.f32 %v656_v5, %v41_v43 }
  0x92   :  { %488 = vpow2.f32 %v98_v39 }
  0x93   :  { %v96_v48 = vmul.f32 1.442695, %v79_v44  ;;  %v100_v49 = vmul.f32 1.442695, %v81_v45 }
  0x94   :  { %v44_v50 = vpop.xlane.xlu0 %43  ;;  %v47_v51 = vpop.xlane.xlu1 %46 }
  0x95   :  { %490 = vpow2.f32 %v96_v48  ;;  %v82_v54 = vsub.f32 %v665_v8, %v44_v50  ;;  %v83_v0 = vsub.f32 %v670_v9, %v47_v51 }
  0x96   :  { %492 = vpow2.f32 %v100_v49 }
  0x97   :  { %v102_v1 = vmul.f32 1.442695, %v82_v54  ;;  %v104_v55 = vmul.f32 1.442695, %v83_v0 }
  0x98   :  { %v50_v56 = vpop.xlane.xlu0 %49  ;;  %v53_v57 = vpop.xlane.xlu1 %52 }
  0x99   :  { %494 = vpow2.f32 %v102_v1  ;;  %v84_v2 = vsub.f32 %v679_v12, %v50_v56  ;;  %v85_v5 = vsub.f32 %v684_v13, %v53_v57 }
  0x9a   :  { %496 = vpow2.f32 %v104_v55 }
  0x9b   :  { %v106_v60 = vmul.f32 1.442695, %v84_v2  ;;  %v108_v61 = vmul.f32 1.442695, %v85_v5 }
  0x9c   :  { %v56_v62 = vpop.xlane.xlu0 %55  ;;  %v59_v63 = vpop.xlane.xlu1 %58 }
  0x9d   :  { %498 = vpow2.f32 %v106_v60  ;;  %v86_v8 = vsub.f32 %v693_v16, %v56_v62  ;;  %v87_v9 = vsub.f32 %v698_v17, %v59_v63 }
  0x9e   :  { %v884_v6 = vpop.eup %486  ;;  %500 = vpow2.f32 %v108_v61 }
  0x9f   :  { %v886_v7 = vpop.eup %488  ;;  %v110_v10 = vmul.f32 1.442695, %v86_v8  ;;  %v112_v11 = vmul.f32 1.442695, %v87_v9  ;;  %v126_v12 = vsel %vm29_vm0, %v884_v6, 0.0 }
  0xa0   :  { %127 = vadd.xlane.f32.xlu0 %v126_v12  ;;  %v62_v13 = vpop.xlane.xlu0 %61  ;;  %v65_v18 = vpop.xlane.xlu1 %64  ;;  %v132_v17 = vsel %vm29_vm0, %v886_v7, 0.0 }
  0xa1   :  { %502 = vpow2.f32 %v110_v10  ;;  %v88_v19 = vsub.f32 %v707_v20, %v62_v13  ;;  %v89_v16 = vsub.f32 %v712_v21, %v65_v18 }
  0xa2   :  { %v894_v22 = vpop.eup %490  ;;  %504 = vpow2.f32 %v112_v11 }
  0xa3   :  { %v896_v23 = vpop.eup %492  ;;  %v114_v30 = vmul.f32 1.442695, %v88_v19  ;;  %v116_v31 = vmul.f32 1.442695, %v89_v16  ;;  %v129_v32 = vsel %vm29_vm0, %v894_v22, 0.0 }
  0xa4   :  { %133 = vadd.xlane.f32.xlu0 %v132_v17  ;;  %130 = vadd.xlane.f32.xlu1 %v129_v32  ;;  %v68_v33 = vpop.xlane.xlu0 %67  ;;  %v71_v36 = vpop.xlane.xlu1 %70  ;;  %v135_v37 = vsel %vm29_vm0, %v896_v23, 0.0 }
  0xa5   :  { %506 = vpow2.f32 %v114_v30  ;;  %v90_v20 = vsub.f32 %v721_v24, %v68_v33  ;;  %v91_v21 = vsub.f32 %v726_v25, %v71_v36 }
  0xa6   :  { %v904_v38 = vpop.eup %494  ;;  %508 = vpow2.f32 %v116_v31 }
  0xa7   :  { %v906_v39 = vpop.eup %496  ;;  %v118_v42 = vmul.f32 1.442695, %v90_v20  ;;  %v120_v43 = vmul.f32 1.442695, %v91_v21  ;;  %v138_v44 = vsel %vm29_vm0, %v904_v38, 0.0 }
  0xa8   :  { %136 = vadd.xlane.f32.xlu1 %v135_v37  ;;  %139 = vadd.xlane.f32.xlu0 %v138_v44  ;;  %v74_v45 = vpop.xlane.xlu0 %73  ;;  %v77_v48 = vpop.xlane.xlu1 %76  ;;  %v141_v49 = vsel %vm29_vm0, %v906_v39, 0.0 }
  0xa9   :  { %510 = vpow2.f32 %v118_v42  ;;  %v92_v24 = vsub.f32 %v735_v28, %v74_v45  ;;  %v93_v25 = vsub.f32 %v740_v29, %v77_v48 }
  0xaa   :  { %v914_v50 = vpop.eup %498  ;;  %512 = vpow2.f32 %v120_v43 }
  0xab   :  { %v916_v51 = vpop.eup %500  ;;  %v122_v54 = vmul.f32 1.442695, %v92_v24  ;;  %v124_v0 = vmul.f32 1.442695, %v93_v25  ;;  %v144_v1 = vsel %vm29_vm0, %v914_v50, 0.0 }
  0xac   :  { %142 = vadd.xlane.f32.xlu1 %v141_v49  ;;  %145 = vadd.xlane.f32.xlu0 %v144_v1  ;;  %v272_v55 = vpop.xlane.xlu0 %271  ;;  %v275_v56 = vpop.xlane.xlu1 %274  ;;  %v147_v57 = vsel %vm29_vm0, %v916_v51, 0.0 }
  0xad   :  { %514 = vpow2.f32 %v122_v54  ;;  %v318_v28 = vsub.f32 %v753_v34, %v272_v55  ;;  %v319_v29 = vsub.f32 %v756_v35, %v275_v56 }
  0xae   :  { %v924_v2 = vpop.eup %502  ;;  %516 = vpow2.f32 %v124_v0 }
  0xaf   :  { %v926_v5 = vpop.eup %504  ;;  %v334_v60 = vmul.f32 1.442695, %v318_v28  ;;  %v336_v61 = vmul.f32 1.442695, %v319_v29  ;;  %v150_v62 = vsel %vm29_vm0, %v924_v2, 0.0 }
  0xb0   :  { %148 = vadd.xlane.f32.xlu1 %v147_v57  ;;  %151 = vadd.xlane.f32.xlu0 %v150_v62  ;;  %v278_v63 = vpop.xlane.xlu0 %277  ;;  %v281_v8 = vpop.xlane.xlu1 %280  ;;  %v153_v9 = vsel %vm29_vm0, %v926_v5, 0.0 }
  0xb1   :  { %518 = vpow2.f32 %v334_v60  ;;  %v320_v34 = vsub.f32 %v769_v40, %v278_v63  ;;  %v321_v35 = vsub.f32 %v772_v41, %v281_v8 }
  0xb2   :  { %v934_v10 = vpop.eup %506  ;;  %520 = vpow2.f32 %v336_v61 }
  0xb3   :  { %v936_v11 = vpop.eup %508  ;;  %v338_v12 = vmul.f32 1.442695, %v320_v34  ;;  %v340_v13 = vmul.f32 1.442695, %v321_v35  ;;  %v156_v18 = vsel %vm29_vm0, %v934_v10, 0.0 }
  0xb4   :  { %154 = vadd.xlane.f32.xlu1 %v153_v9  ;;  %157 = vadd.xlane.f32.xlu0 %v156_v18  ;;  %v284_v19 = vpop.xlane.xlu0 %283  ;;  %v287_v16 = vpop.xlane.xlu1 %286  ;;  %v159_v17 = vsel %vm29_vm0, %v936_v11, 0.0 }
  0xb5   :  { %522 = vpow2.f32 %v338_v12  ;;  %v322_v40 = vsub.f32 %v785_v46, %v284_v19  ;;  %v323_v41 = vsub.f32 %v788_v47, %v287_v16 }
  0xb6   :  { %v944_v30 = vpop.eup %510  ;;  %524 = vpow2.f32 %v340_v13 }
  0xb7   :  { %v946_v31 = vpop.eup %512  ;;  %v342_v32 = vmul.f32 1.442695, %v322_v40  ;;  %v344_v33 = vmul.f32 1.442695, %v323_v41  ;;  %v162_v36 = vsel %vm29_vm0, %v944_v30, 0.0 }
  0xb8   :  { %160 = vadd.xlane.f32.xlu1 %v159_v17  ;;  %163 = vadd.xlane.f32.xlu0 %v162_v36  ;;  %v290_v20 = vpop.xlane.xlu0 %289  ;;  %v293_v21 = vpop.xlane.xlu1 %292  ;;  %v165_v37 = vsel %vm29_vm0, %v946_v31, 0.0 }
  0xb9   :  { %526 = vpow2.f32 %v342_v32  ;;  %v324_v46 = vsub.f32 %v801_v52, %v290_v20  ;;  %v325_v47 = vsub.f32 %v804_v53, %v293_v21 }
  0xba   :  { %v954_v42 = vpop.eup %514  ;;  %528 = vpow2.f32 %v344_v33 }
  0xbb   :  { %v956_v43 = vpop.eup %516  ;;  %v346_v44 = vmul.f32 1.442695, %v324_v46  ;;  %v348_v45 = vmul.f32 1.442695, %v325_v47  ;;  %v168_v48 = vsel %vm29_vm0, %v954_v42, 0.0 }
  0xbc   :  { %166 = vadd.xlane.f32.xlu1 %v165_v37  ;;  %169 = vadd.xlane.f32.xlu0 %v168_v48  ;;  %v296_v24 = vpop.xlane.xlu0 %295  ;;  %v299_v25 = vpop.xlane.xlu1 %298  ;;  %v171_v49 = vsel %vm29_vm0, %v956_v43, 0.0 }
  0xbd   :  { %530 = vpow2.f32 %v346_v44  ;;  %v326_v52 = vsub.f32 %v817_v58, %v296_v24  ;;  %v327_v53 = vsub.f32 %v820_v59, %v299_v25 }
  0xbe   :  { %v964_v54 = vpop.eup %518  ;;  %532 = vpow2.f32 %v348_v45 }
  0xbf   :  { %v966_v0 = vpop.eup %520  ;;  %v350_v1 = vmul.f32 1.442695, %v326_v52  ;;  %v352_v55 = vmul.f32 1.442695, %v327_v53  ;;  %v366_v56 = vsel %vm29_vm0, %v964_v54, 0.0 }
  0xc0   :  { %172 = vadd.xlane.f32.xlu1 %v171_v49  ;;  %367 = vadd.xlane.f32.xlu0 %v366_v56  ;;  %v302_v28 = vpop.xlane.xlu0 %301  ;;  %v305_v29 = vpop.xlane.xlu1 %304  ;;  %v369_v57 = vsel %vm29_vm0, %v966_v0, 0.0 }
  0xc1   :  { %534 = vpow2.f32 %v350_v1  ;;  %v328_v58 = vsub.f32 %v833_v3, %v302_v28  ;;  %v329_v59 = vsub.f32 %v836_v4, %v305_v29 }
  0xc2   :  { %v974_v60 = vpop.eup %522  ;;  %536 = vpow2.f32 %v352_v55 }
  0xc3   :  { %v976_v61 = vpop.eup %524  ;;  %v354_v62 = vmul.f32 1.442695, %v328_v58  ;;  %v356_v63 = vmul.f32 1.442695, %v329_v59  ;;  %v372_v8 = vsel %vm29_vm0, %v974_v60, 0.0 }
  0xc4   :  { %370 = vadd.xlane.f32.xlu1 %v369_v57  ;;  %373 = vadd.xlane.f32.xlu0 %v372_v8  ;;  %v308_v34 = vpop.xlane.xlu0 %307  ;;  %v311_v35 = vpop.xlane.xlu1 %310  ;;  %v375_v9 = vsel %vm29_vm0, %v976_v61, 0.0 }
  0xc5   :  { %538 = vpow2.f32 %v354_v62  ;;  %v330_v3 = vsub.f32 %v849_v14, %v308_v34  ;;  %v331_v4 = vsub.f32 %v852_v15, %v311_v35 }
  0xc6   :  { %v984_v12 = vpop.eup %526  ;;  %540 = vpow2.f32 %v356_v63 }
  0xc7   :  { %v986_v13 = vpop.eup %528  ;;  %v358_v18 = vmul.f32 1.442695, %v330_v3  ;;  %v360_v19 = vmul.f32 1.442695, %v331_v4  ;;  %v378_v16 = vsel %vm29_vm0, %v984_v12, 0.0 }
  0xc8   :  { %376 = vadd.xlane.f32.xlu1 %v375_v9  ;;  %379 = vadd.xlane.f32.xlu0 %v378_v16  ;;  %v314_v40 = vpop.xlane.xlu0 %313  ;;  %v317_v41 = vpop.xlane.xlu1 %316  ;;  %v381_v17 = vsel %vm29_vm0, %v986_v13, 0.0 }
  0xc9   :  { %542 = vpow2.f32 %v358_v18  ;;  %v332_v14 = vsub.f32 %v865_v26, %v314_v40  ;;  %v333_v15 = vsub.f32 %v868_v27, %v317_v41 }
  0xca   :  { %v994_v32 = vpop.eup %530  ;;  %544 = vpow2.f32 %v360_v19 }
  0xcb   :  { %v996_v33 = vpop.eup %532  ;;  %v362_v36 = vmul.f32 1.442695, %v332_v14  ;;  %v364_v20 = vmul.f32 1.442695, %v333_v15  ;;  %v384_v21 = vsel %vm29_vm0, %v994_v32, 0.0 }
  0xcc   :  { %382 = vadd.xlane.f32.xlu1 %v381_v17  ;;  %385 = vadd.xlane.f32.xlu0 %v384_v21  ;;  %v387_v26 = vsel %vm29_vm0, %v996_v33, 0.0 }
  0xcd   :  { %546 = vpow2.f32 %v362_v36 }
  0xce   :  { %v1002_v27 = vpop.eup %534  ;;  %548 = vpow2.f32 %v364_v20 }
  0xcf   :  { %v1004_v46 = vpop.eup %536  ;;  %v390_v47 = vsel %vm29_vm0, %v1002_v27, 0.0 }
  0xd0   :  { %388 = vadd.xlane.f32.xlu1 %v387_v26  ;;  %391 = vadd.xlane.f32.xlu0 %v390_v47  ;;  %v393_v37 = vsel %vm29_vm0, %v1004_v46, 0.0 }
  0xd2   :  { %v1010_v44 = vpop.eup %538 }
  0xd3   :  { %v1012_v45 = vpop.eup %540  ;;  %v396_v48 = vsel %vm29_vm0, %v1010_v44, 0.0 }
  0xd4   :  { %394 = vadd.xlane.f32.xlu1 %v393_v37  ;;  %397 = vadd.xlane.f32.xlu0 %v396_v48  ;;  %v399_v24 = vsel %vm29_vm0, %v1012_v45, 0.0 }
  0xd6   :  { %v1018_v25 = vpop.eup %542 }
  0xd7   :  { %v1020_v52 = vpop.eup %544  ;;  %v402_v53 = vsel %vm29_vm0, %v1018_v25, 0.0 }
  0xd8   :  { %400 = vadd.xlane.f32.xlu1 %v399_v24  ;;  %403 = vadd.xlane.f32.xlu0 %v402_v53  ;;  %v405_v49 = vsel %vm29_vm0, %v1020_v52, 0.0 }
  0xda   :  { %v1026_v1 = vpop.eup %546 }
  0xdb   :  { %v1028_v55 = vpop.eup %548  ;;  %v408_v56 = vsel %vm29_vm0, %v1026_v1, 0.0 }
  0xdc   :  { %406 = vadd.xlane.f32.xlu1 %v405_v49  ;;  %409 = vadd.xlane.f32.xlu0 %v408_v56  ;;  %v411_v28 = vsel %vm29_vm0, %v1028_v55, 0.0 }
  0xe0   :  { %412 = vadd.xlane.f32.xlu1 %v411_v28 }
 0x129   :  { %v128_v29 = vpop.xlane.xlu0 %127 }
 0x12a   :  { %550 = vrcp.f32 %v128_v29 }
 0x12d   :  { %v131_v58 = vpop.xlane.xlu1 %130  ;;  %v134_v59 = vpop.xlane.xlu0 %133 }
 0x12e   :  { %552 = vrcp.f32 %v131_v58 }
 0x12f   :  { %554 = vrcp.f32 %v134_v59 }
 0x131   :  { %v137_v57 = vpop.xlane.xlu1 %136  ;;  %v140_v62 = vpop.xlane.xlu0 %139 }
 0x132   :  { %556 = vrcp.f32 %v137_v57 }
 0x133   :  { %558 = vrcp.f32 %v140_v62 }
 0x135   :  { %v143_v63 = vpop.xlane.xlu1 %142  ;;  %v146_v8 = vpop.xlane.xlu0 %145 }
 0x136   :  { %560 = vrcp.f32 %v143_v63 }
 0x137   :  { %v551_v34 = vpop.eup %550  ;;  %562 = vrcp.f32 %v146_v8 }
 0x138   :  { %v206_v35 = vmul.f32 %v551_v34, %v884_v6 }
 0x139   :  { %v149_v3 = vpop.xlane.xlu1 %148  ;;  %v152_v4 = vpop.xlane.xlu0 %151 }
 0x13a   :  { %222 = vst.msk [vmem:[%s1196_s2] sm:$0xff] %vm29_vm0, %v206_v35  ;;  %564 = vrcp.f32 %v149_v3 }
 0x13b   :  { %v553_v9 = vpop.eup %552  ;;  %566 = vrcp.f32 %v152_v4 }
 0x13c   :  { %v555_v18 = vpop.eup %554  ;;  %v207_v19 = vmul.f32 %v553_v9, %v894_v22 }
 0x13d   :  { %v208_v16 = vmul.f32 %v555_v18, %v886_v7  ;;  %v155_v40 = vpop.xlane.xlu1 %154  ;;  %v158_v41 = vpop.xlane.xlu0 %157 }
 0x13e   :  { %223 = vst.msk [vmem:[%s1196_s2 + $0x8] sm:$0xff] %vm29_vm0, %v207_v19  ;;  %568 = vrcp.f32 %v155_v40 }
 0x13f   :  { %v557_v6 = vpop.eup %556  ;;  %224 = vst.msk [vmem:[%s1196_s2 + $0x10] sm:$0xff] %vm29_vm0, %v208_v16  ;;  %570 = vrcp.f32 %v158_v41 }
 0x140   :  { %v559_v14 = vpop.eup %558  ;;  %v209_v22 = vmul.f32 %v557_v6, %v896_v23 }
 0x141   :  { %v210_v7 = vmul.f32 %v559_v14, %v904_v38  ;;  %v161_v15 = vpop.xlane.xlu1 %160  ;;  %v164_v17 = vpop.xlane.xlu0 %163 }
 0x142   :  { %225 = vst.msk [vmem:[%s1196_s2 + $0x18] sm:$0xff] %vm29_vm0, %v209_v22  ;;  %572 = vrcp.f32 %v161_v15 }
 0x143   :  { %v561_v36 = vpop.eup %560  ;;  %226 = vst.msk [vmem:[%s1196_s2 + $0x20] sm:$0xff] %vm29_vm0, %v210_v7  ;;  %574 = vrcp.f32 %v164_v17 }
 0x144   :  { %v563_v20 = vpop.eup %562  ;;  %v211_v23 = vmul.f32 %v561_v36, %v906_v39 }
 0x145   :  { %v212_v38 = vmul.f32 %v563_v20, %v914_v50  ;;  %v167_v21 = vpop.xlane.xlu1 %166  ;;  %v170_v26 = vpop.xlane.xlu0 %169 }
 0x146   :  { %227 = vst.msk [vmem:[%s1196_s2 + $0x28] sm:$0xff] %vm29_vm0, %v211_v23  ;;  %576 = vrcp.f32 %v167_v21 }
 0x147   :  { %v565_v47 = vpop.eup %564  ;;  %228 = vst.msk [vmem:[%s1196_s2 + $0x30] sm:$0xff] %vm29_vm0, %v212_v38  ;;  %578 = vrcp.f32 %v170_v26 }
 0x148   :  { %v567_v37 = vpop.eup %566  ;;  %v213_v39 = vmul.f32 %v565_v47, %v916_v51 }
 0x149   :  { %v214_v50 = vmul.f32 %v567_v37, %v924_v2  ;;  %v173_v48 = vpop.xlane.xlu1 %172  ;;  %v368_v24 = vpop.xlane.xlu0 %367 }
 0x14a   :  { %229 = vst.msk [vmem:[%s1196_s2 + $0x38] sm:$0xff] %vm29_vm0, %v213_v39  ;;  %580 = vrcp.f32 %v173_v48 }
 0x14b   :  { %v569_v53 = vpop.eup %568  ;;  %230 = vst.msk [vmem:[%s1196_s2 + $0x40] sm:$0xff] %vm29_vm0, %v214_v50  ;;  %582 = vrcp.f32 %v368_v24 }
 0x14c   :  { %v571_v49 = vpop.eup %570  ;;  %v215_v51 = vmul.f32 %v569_v53, %v926_v5 }
 0x14d   :  { %v216_v2 = vmul.f32 %v571_v49, %v934_v10  ;;  %v371_v56 = vpop.xlane.xlu1 %370  ;;  %v374_v28 = vpop.xlane.xlu0 %373 }
 0x14e   :  { %231 = vst.msk [vmem:[%s1196_s2 + $0x48] sm:$0xff] %vm29_vm0, %v215_v51  ;;  %584 = vrcp.f32 %v371_v56 }
 0x14f   :  { %v573_v29 = vpop.eup %572  ;;  %232 = vst.msk [vmem:[%s1196_s2 + $0x50] sm:$0xff] %vm29_vm0, %v216_v2  ;;  %586 = vrcp.f32 %v374_v28 }
 0x150   :  { %v575_v58 = vpop.eup %574  ;;  %v217_v5 = vmul.f32 %v573_v29, %v936_v11 }
 0x151   :  { %v218_v10 = vmul.f32 %v575_v58, %v944_v30  ;;  %v377_v59 = vpop.xlane.xlu1 %376  ;;  %v380_v57 = vpop.xlane.xlu0 %379 }
 0x152   :  { %233 = vst.msk [vmem:[%s1196_s2 + $0x58] sm:$0xff] %vm29_vm0, %v217_v5  ;;  %588 = vrcp.f32 %v377_v59 }
 0x153   :  { %v577_v62 = vpop.eup %576  ;;  %234 = vst.msk [vmem:[%s1196_s2 + $0x60] sm:$0xff] %vm29_vm0, %v218_v10  ;;  %590 = vrcp.f32 %v380_v57 }
 0x154   :  { %v579_v63 = vpop.eup %578  ;;  %v219_v11 = vmul.f32 %v577_v62, %v946_v31 }
 0x155   :  { %v220_v30 = vmul.f32 %v579_v63, %v954_v42  ;;  %v383_v8 = vpop.xlane.xlu1 %382  ;;  %v386_v34 = vpop.xlane.xlu0 %385 }
 0x156   :  { %235 = vst.msk [vmem:[%s1196_s2 + $0x68] sm:$0xff] %vm29_vm0, %v219_v11  ;;  %592 = vrcp.f32 %v383_v8 }
 0x157   :  { %v581_v35 = vpop.eup %580  ;;  %236 = vst.msk [vmem:[%s1196_s2 + $0x70] sm:$0xff] %vm29_vm0, %v220_v30  ;;  %594 = vrcp.f32 %v386_v34 }
 0x158   :  { %v583_v3 = vpop.eup %582  ;;  %v221_v31 = vmul.f32 %v581_v35, %v956_v43 }
 0x159   :  { %v446_v42 = vmul.f32 %v583_v3, %v964_v54  ;;  %v389_v4 = vpop.xlane.xlu1 %388  ;;  %v392_v9 = vpop.xlane.xlu0 %391 }
 0x15a   :  { %237 = vst.msk [vmem:[%s1196_s2 + $0x78] sm:$0xff] %vm29_vm0, %v221_v31  ;;  %596 = vrcp.f32 %v389_v4 }
 0x15b   :  { %v585_v18 = vpop.eup %584  ;;  %462 = vst.msk [vmem:[%s1197_s3] sm:$0xff] %vm29_vm0, %v446_v42  ;;  %598 = vrcp.f32 %v392_v9 }
 0x15c   :  { %v587_v19 = vpop.eup %586  ;;  %v447_v43 = vmul.f32 %v585_v18, %v966_v0 }
 0x15d   :  { %v448_v54 = vmul.f32 %v587_v19, %v974_v60  ;;  %v395_v16 = vpop.xlane.xlu1 %394  ;;  %v398_v40 = vpop.xlane.xlu0 %397 }
 0x15e   :  { %463 = vst.msk [vmem:[%s1197_s3 + $0x8] sm:$0xff] %vm29_vm0, %v447_v43  ;;  %600 = vrcp.f32 %v395_v16 }
 0x15f   :  { %v589_v41 = vpop.eup %588  ;;  %464 = vst.msk [vmem:[%s1197_s3 + $0x10] sm:$0xff] %vm29_vm0, %v448_v54  ;;  %602 = vrcp.f32 %v398_v40 }
 0x160   :  { %v591_v6 = vpop.eup %590  ;;  %v449_v0 = vmul.f32 %v589_v41, %v976_v61 }
 0x161   :  { %v450_v60 = vmul.f32 %v591_v6, %v984_v12  ;;  %v401_v14 = vpop.xlane.xlu1 %400  ;;  %v404_v22 = vpop.xlane.xlu0 %403 }
 0x162   :  { %465 = vst.msk [vmem:[%s1197_s3 + $0x18] sm:$0xff] %vm29_vm0, %v449_v0  ;;  %604 = vrcp.f32 %v401_v14 }
 0x163   :  { %v593_v7 = vpop.eup %592  ;;  %466 = vst.msk [vmem:[%s1197_s3 + $0x20] sm:$0xff] %vm29_vm0, %v450_v60  ;;  %606 = vrcp.f32 %v404_v22 }
 0x164   :  { %v595_v15 = vpop.eup %594  ;;  %v451_v61 = vmul.f32 %v593_v7, %v986_v13 }
 0x165   :  { %v452_v12 = vmul.f32 %v595_v15, %v994_v32  ;;  %v407_v17 = vpop.xlane.xlu1 %406  ;;  %v410_v36 = vpop.xlane.xlu0 %409 }
 0x166   :  { %467 = vst.msk [vmem:[%s1197_s3 + $0x28] sm:$0xff] %vm29_vm0, %v451_v61  ;;  %608 = vrcp.f32 %v407_v17 }
 0x167   :  { %v597_v20 = vpop.eup %596  ;;  %468 = vst.msk [vmem:[%s1197_s3 + $0x30] sm:$0xff] %vm29_vm0, %v452_v12  ;;  %610 = vrcp.f32 %v410_v36 }
 0x168   :  { %v599_v23 = vpop.eup %598  ;;  %v453_v13 = vmul.f32 %v597_v20, %v996_v33 }
 0x169   :  { %v454_v32 = vmul.f32 %v599_v23, %v1002_v27  ;;  %v413_v38 = vpop.xlane.xlu1 %412 }
 0x16a   :  { %469 = vst.msk [vmem:[%s1197_s3 + $0x38] sm:$0xff] %vm29_vm0, %v453_v13  ;;  %612 = vrcp.f32 %v413_v38 }
 0x16b   :  { %v601_v21 = vpop.eup %600  ;;  %470 = vst.msk [vmem:[%s1197_s3 + $0x40] sm:$0xff] %vm29_vm0, %v454_v32 }
 0x16c   :  { %v603_v26 = vpop.eup %602  ;;  %v455_v47 = vmul.f32 %v601_v21, %v1004_v46 }
 0x16d   :  { %v456_v33 = vmul.f32 %v603_v26, %v1010_v44 }
 0x16e   :  { %471 = vst.msk [vmem:[%s1197_s3 + $0x48] sm:$0xff] %vm29_vm0, %v455_v47 }
 0x16f   :  { %v605_v27 = vpop.eup %604  ;;  %472 = vst.msk [vmem:[%s1197_s3 + $0x50] sm:$0xff] %vm29_vm0, %v456_v33 }
 0x170   :  { %v607_v37 = vpop.eup %606  ;;  %v457_v39 = vmul.f32 %v605_v27, %v1012_v45 }
 0x171   :  { %v458_v50 = vmul.f32 %v607_v37, %v1018_v25 }
 0x172   :  { %473 = vst.msk [vmem:[%s1197_s3 + $0x58] sm:$0xff] %vm29_vm0, %v457_v39 }
 0x173   :  { %v609_v46 = vpop.eup %608  ;;  %474 = vst.msk [vmem:[%s1197_s3 + $0x60] sm:$0xff] %vm29_vm0, %v458_v50 }
 0x174   :  { %v611_v44 = vpop.eup %610  ;;  %v459_v48 = vmul.f32 %v609_v46, %v1020_v52 }
 0x175   :  { %v460_v24 = vmul.f32 %v611_v44, %v1026_v1 }
 0x176   :  { %475 = vst.msk [vmem:[%s1197_s3 + $0x68] sm:$0xff] %vm29_vm0, %v459_v48 }
 0x177   :  { %v613_v45 = vpop.eup %612  ;;  %476 = vst.msk [vmem:[%s1197_s3 + $0x70] sm:$0xff] %vm29_vm0, %v460_v24 }
 0x178   :  { %v461_v25 = vmul.f32 %v613_v45, %v1028_v55 }
 0x17a   :  { %477 = vst.msk [vmem:[%s1197_s3 + $0x78] sm:$0xff] %vm29_vm0, %v461_v25 }

</bundles_post_ra>
